<compile_context>
chip_gen: v6e
topology: v6e:2x2x1
jax: 0.10.0
libtpu: 0.0.40
codegen_flags: <defaults>
</compile_context>

<pallas_src>
import functools

import jax
import jax.numpy as jnp
from jax.experimental import pallas as pl
from jax.experimental.pallas import tpu as pltpu


LANE = 128  # TPU vreg lane width; feature dims padded to a multiple of this.


def _round_up(x, m):
    return ((x + m - 1) // m) * m


# ----------------------------- Pallas kernel -------------------------------

def _gcn_fused_kernel(x_ref, a_ref, w_ref, b_ref, o_ref, h_ref, t_ref, *, tm):
    """One grid step = one (graph g, layer l, row-tile i) of the fused GCN.

    Grid: (G, L, R) with R = N_pad // tm; graphs "parallel", layers / row
    tiles "arbitrary" (sequential).

    Refs (blocks):
      x_ref : (1, N_pad, P)  bf16  node features of graph g (constant per g)
      a_ref : (1, tm, N_pad) bf16  row block i of graph g's normalized A
      w_ref : (1, P, P)      bf16  weight of layer l
      b_ref : (1, 1, P)      f32   bias of layer l
      o_ref : (1, tm, P)     f32   output row block (lane-dense store)
      h_ref : (N_pad, P)     bf16  VMEM scratch: activations carried across layers
      t_ref : (N_pad, P)     bf16  VMEM scratch: T = H @ W_l for current layer
    """
    l = pl.program_id(1)
    i = pl.program_id(2)

    # First row tile of the first layer: stage the node features into the
    # resident activation scratch H (per graph; re-done when g changes).
    @pl.when(jnp.logical_and(l == 0, i == 0))
    def _():
        h_ref[...] = x_ref[0]

    # First row tile of every layer: compute T = H @ W_l for the whole graph
    # once, reused by every subsequent row block of the A aggregation.
    @pl.when(i == 0)
    def _():
        t = jnp.dot(h_ref[...], w_ref[0], preferred_element_type=jnp.float32)
        t_ref[...] = t.astype(t_ref.dtype)

    # Row-block neighbour aggregation on the MXU: Y_rows = A_rows @ T + b.
    # a_ref is read right before the matmul (short live range, no hoisting).
    y = jnp.dot(a_ref[0], t_ref[...], preferred_element_type=jnp.float32)
    y = y + b_ref[0]                       # f32 elementwise tail (v5e-safe)

    # The final layer has no ReLU; earlier layers' writes to the same output
    # block are simply overwritten by the last layer's writes.
    o_ref[0] = y.astype(o_ref.dtype)

    # ReLU'd activation carried in VMEM for the next layer (unused after the
    # last layer, so the unconditional ReLU here is harmless).
    row0 = pl.multiple_of(i * tm, tm)
    h_ref[pl.ds(row0, tm), :] = jnp.maximum(y, 0.0).astype(h_ref.dtype)


# ------------------------------ JAX glue ------------------------------------

def build_norm_adj(edge_index, num_nodes):
    """Dense  D^{-1/2} (A + I) D^{-1/2}  from an edge_index of shape (2, E).

    Duplicate edges sum (scatter-add) and self-loops are added on top, which
    mirrors torch_geometric's gcn_norm with unit edge weights (assuming the
    PyTorch side does not coalesce duplicate edges).
    """
    src, dst = edge_index[0], edge_index[1]
    a = jnp.zeros((num_nodes, num_nodes), jnp.float32)
    a = a.at[src, dst].add(1.0)
    a = a + jnp.eye(num_nodes, dtype=jnp.float32)   # self-loops
    deg = a.sum(axis=1)
    d_inv_sqrt = jnp.where(deg > 0, 1.0 / jnp.sqrt(deg), 0.0)
    return d_inv_sqrt[:, None] * a * d_inv_sqrt[None, :]


def init_gnn_params(key, node_feature_size, output_embedding_size,
                    num_layers, hidden_dim):
    """Deterministic Glorot-style init; mirrors GCNConv(in, out) weight/bias."""
    layer_sizes = ([node_feature_size]
                   + [hidden_dim] * num_layers
                   + [output_embedding_size])
    params = []
    for i in range(len(layer_sizes) - 1):
        f_in, f_out = layer_sizes[i], layer_sizes[i + 1]
        key, wk = jax.random.split(key)
        scale = jnp.sqrt(6.0 / (f_in + f_out))
        w = jax.random.uniform(wk, (f_in, f_out), jnp.float32, -scale, scale)
        b = jnp.zeros((1, f_out), jnp.float32)
        params.append((w, b))
    return params


def gnn_forward(x, a_norm, params, *, tm=128):
    """Batched fused GNN forward.

    x:      [G, N, F0]  node features per graph
    a_norm: [G, N, N]   dense normalized adjacency per graph (built once)
    params: list of (W [F_in, F_out], b [1, F_out]) shared across graphs
    tm:     A row-tile size (128 fills the v5e MXU; 256 is better on v6e/v7x
            when N is large enough).
    """
    g, n, f0 = x.shape
    num_layers = len(params)
    feat_dims = [f0] + [w.shape[1] for (w, _) in params]
    p = max(_round_up(d, LANE) for d in feat_dims)   # common lane-dense width
    assert tm % 8 == 0
    n_pad = _round_up(n, max(tm, LANE))
    r = n_pad // tm

    # Zero-pad feature axes to P and node axes to N_pad.  Padded weight cols,
    # bias entries and A rows/cols are zero, so the real rows/cols of the
    # result are unaffected; padded output rows are sliced off at the end.
    # (Degrees / D^{-1/2} were computed on the unpadded graph.)
    x_pad = jnp.zeros((g, n_pad, p), jnp.float32).at[:, :n, :f0].set(x)
    x_pad = x_pad.astype(jnp.bfloat16)               # bf16 MXU operand; half DMA
    a_pad = jnp.zeros((g, n_pad, n_pad), jnp.float32).at[:, :n, :n].set(a_norm)
    a_pad = a_pad.astype(jnp.bfloat16)

    w_stack = jnp.zeros((num_layers, p, p), jnp.float32)
    b_stack = jnp.zeros((num_layers, 1, p), jnp.float32)
    for i, (w, b) in enumerate(params):
        f_in, f_out = w.shape
        w_stack = w_stack.at[i, :f_in, :f_out].set(w)
        b_stack = b_stack.at[i, 0, :f_out].set(b.reshape(-1))
    w_stack = w_stack.astype(jnp.bfloat16)

    grid = (g, num_layers, r)

    flops = g * num_layers * (2 * n_pad * p * p + 2 * n_pad * n_pad * p)
    bytes_accessed = (g * num_layers * n_pad * n_pad * 2    # A row blocks / layer
                      + g * n_pad * p * 2                   # X
                      + num_layers * (p * p * 2 + p * 4)    # W, b
                      + g * num_layers * n_pad * p * 4)     # output writebacks

    # Explicit VMEM budget: double-buffered pipeline blocks + resident scratch,
    # with 2x headroom, clamped to fit the smallest generation (v7x: 64 MiB/TC).
    vmem_est = (2 * tm * n_pad * 2          # A row block (double-buffered, bf16)
                + 2 * n_pad * p * 2         # X block (bf16)
                + 2 * (p * p * 2 + p * 4)   # W_l, b_l
                + 2 * tm * p * 4            # output block (f32)
                + 2 * n_pad * p * 2)        # H + T scratch (bf16)
    vmem_limit = int(min(max(2 * vmem_est, 32 * 1024 * 1024), 48 * 1024 * 1024))

    kernel = functools.partial(_gcn_fused_kernel, tm=tm)

    out_pad = pl.pallas_call(
        kernel,
        out_shape=jax.ShapeDtypeStruct((g, n_pad, p), jnp.float32),
        grid=grid,
        in_specs=[
            pl.BlockSpec((1, n_pad, p), lambda gi, li, ri: (gi, 0, 0)),    # X
            pl.BlockSpec((1, tm, n_pad), lambda gi, li, ri: (gi, ri, 0)),  # A rows
            pl.BlockSpec((1, p, p), lambda gi, li, ri: (li, 0, 0)),        # W_l
            pl.BlockSpec((1, 1, p), lambda gi, li, ri: (li, 0, 0)),        # b_l
        ],
        out_specs=pl.BlockSpec((1, tm, p), lambda gi, li, ri: (gi, ri, 0)),
        scratch_shapes=[pltpu.VMEM((n_pad, p), jnp.bfloat16),   # H activations
                        pltpu.VMEM((n_pad, p), jnp.bfloat16)],  # T = H @ W_l
        compiler_params=pltpu.CompilerParams(
            dimension_semantics=("parallel", "arbitrary", "arbitrary"),
            vmem_limit_bytes=vmem_limit),
        cost_estimate=pl.CostEstimate(flops=flops, transcendentals=0,
                                      bytes_accessed=bytes_accessed),
    )(x_pad, a_pad, w_stack, b_stack)

    return out_pad[:, :n, :feat_dims[-1]]


def reference_forward(x, a_norm, params, *, bf16_operands):
    """Plain-JAX batched reference. bf16_operands=True mirrors kernel casts."""
    cast = (lambda v: v.astype(jnp.bfloat16)) if bf16_operands else (lambda v: v)
    a = cast(a_norm)
    h = cast(x)
    num_layers = len(params)
    y = None
    for i, (w, b) in enumerate(params):
        t = jnp.einsum('gnf,fo->gno', h, cast(w),
                       preferred_element_type=jnp.float32)
        t = cast(t)
        y = jnp.einsum('gmn,gno->gmo', a, t,
                       preferred_element_type=jnp.float32)
        y = y + b.reshape(1, 1, -1)
        if i != num_layers - 1:
            y = jnp.maximum(y, 0.0)
        h = cast(y)
    return y


# ------------------------------- main ---------------------------------------

if __name__ == "__main__":
    # Batch of 2 small graphs, 256 nodes each, 8-dim features, 2 hidden layers
    # of 32, 16-dim output embedding (=> 3 GCNConv layers, as in the module).
    num_graphs = 2
    num_nodes = 256
    node_feature_size = 8
    hidden_dim = 32
    output_embedding_size = 16
    num_layers = 2

    key = jax.random.PRNGKey(0)
    key, xk, ek = jax.random.split(key, 3)

    # Node features.
    x = jax.random.normal(
        xk, (num_graphs, num_nodes, node_feature_size), jnp.float32)

    # Deterministic edge sets per graph: ring + random undirected chords.
    a_list = []
    for _ in range(num_graphs):
        ek, k1, k2 = jax.random.split(ek, 3)
        ring_src = jnp.arange(num_nodes, dtype=jnp.int32)
        ring_dst = (ring_src + 1) % num_nodes
        extra_src = jax.random.randint(k1, (32,), 0, num_nodes, jnp.int32)
        extra_dst = jax.random.randint(k2, (32,), 0, num_nodes, jnp.int32)
        src = jnp.concatenate([ring_src, ring_dst, extra_src, extra_dst])
        dst = jnp.concatenate([ring_dst, ring_src, extra_dst, extra_src])
        edge_index = jnp.stack([src, dst])
        a_list.append(build_norm_adj(edge_index, num_nodes))
    a_norm = jnp.stack(a_list)   # built once per graph, hoisted out of forward

    params = init_gnn_params(key, node_feature_size, output_embedding_size,
                             num_layers, hidden_dim)

    out = gnn_forward(x, a_norm, params, tm=128)
    out = jax.block_until_ready(out)
    assert out.shape == (num_graphs, num_nodes, output_embedding_size)

    # 1) Tight check against a reference that mirrors the kernel's bf16 casts.
    ref_bf16 = reference_forward(x, a_norm, params, bf16_operands=True)
    assert jnp.allclose(out, ref_bf16, atol=1e-2, rtol=1e-2), float(
        jnp.max(jnp.abs(out - ref_bf16)))

    # 2) Loose check against the pure-f32 reference (bf16 operand rounding).
    ref_f32 = reference_forward(x, a_norm, params, bf16_operands=False)
    assert jnp.allclose(out, ref_f32, atol=1e-1, rtol=1e-1), float(
        jnp.max(jnp.abs(out - ref_f32)))

    print("KERNEL_OK")
</pallas_src>

<mosaic_0001>
module attributes {stable_mosaic.version = 11 : i64} {
  func.func @_gcn_fused_kernel(%arg0: i32, %arg1: i32, %arg2: i32, %arg3: memref<1x256x128xbf16, #tpu.memory_space<vmem>>, %arg4: memref<1x128x256xbf16, #tpu.memory_space<vmem>>, %arg5: memref<1x128x128xbf16, #tpu.memory_space<vmem>>, %arg6: memref<1x1x128xf32, #tpu.memory_space<vmem>>, %arg7: memref<1x128x128xf32, #tpu.memory_space<vmem>>, %arg8: memref<256x128xbf16, #tpu.memory_space<vmem>>, %arg9: memref<256x128xbf16, #tpu.memory_space<vmem>>) attributes {dimension_semantics = [#tpu.dimension_semantics<parallel>, #tpu.dimension_semantics<arbitrary>, #tpu.dimension_semantics<arbitrary>], iteration_bounds = array<i64: 2, 3, 2>, scalar_prefetch = 0 : i64, scratch_operands = 2 : i64, tpu.core_type = #tpu.core_type<tc>, window_params = [{transform_indices = @transform_0, window_bounds = array<i64: 1, 256, 128>}, {transform_indices = @transform_1, window_bounds = array<i64: 1, 128, 256>}, {transform_indices = @transform_2, window_bounds = array<i64: 1, 128, 128>}, {transform_indices = @transform_3, window_bounds = array<i64: 1, 1, 128>}, {transform_indices = @transform_4, window_bounds = array<i64: 1, 128, 128>}]} {
    %c0_i32 = arith.constant 0 : i32
    %0 = arith.cmpi eq, %arg1, %c0_i32 : i32
    %c0_i32_0 = arith.constant 0 : i32
    %1 = arith.cmpi eq, %arg2, %c0_i32_0 : i32
    %2 = arith.andi %0, %1 : i1
    %3 = arith.extui %2 : i1 to i32
    %c0_i32_1 = arith.constant 0 : i32
    %4 = arith.cmpi ne, %3, %c0_i32_1 : i32
    scf.if %4 {
      %c0_16 = arith.constant 0 : index
      %c0_17 = arith.constant 0 : index
      %c0_18 = arith.constant 0 : index
      %26 = vector.load %arg3[%c0_16, %c0_17, %c0_18] : memref<1x256x128xbf16, #tpu.memory_space<vmem>>, vector<1x256x128xbf16>
      %27 = vector.shape_cast %26 : vector<1x256x128xbf16> to vector<256x128xbf16>
      %c0_19 = arith.constant 0 : index
      %c0_20 = arith.constant 0 : index
      %28 = vector.load %arg8[%c0_19, %c0_20] : memref<256x128xbf16, #tpu.memory_space<vmem>>, vector<256x128xbf16>
      tpu.vector_store %arg8[%c0_19, %c0_20], %27 {strides = array<i32>} : memref<256x128xbf16, #tpu.memory_space<vmem>>, vector<256x128xbf16>,
    } else {
    }
    %c0_i32_2 = arith.constant 0 : i32
    %5 = arith.cmpi eq, %arg2, %c0_i32_2 : i32
    %6 = arith.extui %5 : i1 to i32
    %c0_i32_3 = arith.constant 0 : i32
    %7 = arith.cmpi ne, %6, %c0_i32_3 : i32
    scf.if %7 {
      %c0_16 = arith.constant 0 : index
      %c0_17 = arith.constant 0 : index
      %26 = vector.load %arg8[%c0_16, %c0_17] : memref<256x128xbf16, #tpu.memory_space<vmem>>, vector<256x128xbf16>
      %c0_18 = arith.constant 0 : index
      %c0_19 = arith.constant 0 : index
      %c0_20 = arith.constant 0 : index
      %27 = vector.load %arg5[%c0_18, %c0_19, %c0_20] : memref<1x128x128xbf16, #tpu.memory_space<vmem>>, vector<1x128x128xbf16>
      %28 = vector.shape_cast %27 : vector<1x128x128xbf16> to vector<128x128xbf16>
      %cst_21 = arith.constant dense<0.000000e+00> : vector<256x128xf32>
      %29 = tpu.matmul %26, %28, %cst_21 {dimension_numbers = #tpu.dot_dimension_numbers<[1], [0], [0], [1], [0, 0, 1, 1], [], []>} : vector<256x128xbf16>, vector<128x128xbf16>, vector<256x128xf32> -> vector<256x128xf32>
      %30 = arith.truncf %29 : vector<256x128xf32> to vector<256x128xbf16>
      %c0_22 = arith.constant 0 : index
      %c0_23 = arith.constant 0 : index
      %31 = vector.load %arg9[%c0_22, %c0_23] : memref<256x128xbf16, #tpu.memory_space<vmem>>, vector<256x128xbf16>
      tpu.vector_store %arg9[%c0_22, %c0_23], %30 {strides = array<i32>} : memref<256x128xbf16, #tpu.memory_space<vmem>>, vector<256x128xbf16>,
    } else {
    }
    %c0 = arith.constant 0 : index
    %c0_4 = arith.constant 0 : index
    %c0_5 = arith.constant 0 : index
    %8 = vector.load %arg4[%c0, %c0_4, %c0_5] : memref<1x128x256xbf16, #tpu.memory_space<vmem>>, vector<1x128x256xbf16>
    %9 = vector.shape_cast %8 : vector<1x128x256xbf16> to vector<128x256xbf16>
    %c0_6 = arith.constant 0 : index
    %c0_7 = arith.constant 0 : index
    %10 = vector.load %arg9[%c0_6, %c0_7] : memref<256x128xbf16, #tpu.memory_space<vmem>>, vector<256x128xbf16>
    %cst = arith.constant dense<0.000000e+00> : vector<128x128xf32>
    %11 = tpu.matmul %9, %10, %cst {dimension_numbers = #tpu.dot_dimension_numbers<[1], [0], [0], [1], [0, 0, 1, 1], [], []>} : vector<128x256xbf16>, vector<256x128xbf16>, vector<128x128xf32> -> vector<128x128xf32>
    %c0_8 = arith.constant 0 : index
    %c0_9 = arith.constant 0 : index
    %c0_10 = arith.constant 0 : index
    %12 = vector.load %arg6[%c0_8, %c0_9, %c0_10] : memref<1x1x128xf32, #tpu.memory_space<vmem>>, vector<1x1x128xf32>
    %13 = vector.shape_cast %12 : vector<1x1x128xf32> to vector<1x128xf32>
    %14 = vector.broadcast %13 : vector<1x128xf32> to vector<128x128xf32>
    %15 = arith.addf %11, %14 : vector<128x128xf32>
    %c0_11 = arith.constant 0 : index
    %c0_12 = arith.constant 0 : index
    %c0_13 = arith.constant 0 : index
    %16 = vector.load %arg7[%c0_11, %c0_12, %c0_13] : memref<1x128x128xf32, #tpu.memory_space<vmem>>, vector<1x128x128xf32>
    %17 = vector.shape_cast %16 : vector<1x128x128xf32> to vector<128x128xf32>
    %18 = vector.shape_cast %15 : vector<128x128xf32> to vector<1x128x128xf32>
    tpu.vector_store %arg7[%c0_11, %c0_12, %c0_13], %18 {strides = array<i32>} : memref<1x128x128xf32, #tpu.memory_space<vmem>>, vector<1x128x128xf32>,
    %c128_i32 = arith.constant 128 : i32
    %19 = arith.muli %arg2, %c128_i32 : i32
    %20 = tpu.assume_multiple %19, 128 : i32
    %cst_14 = arith.constant 0.000000e+00 : f32
    %21 = vector.broadcast %cst_14 : f32 to vector<128x128xf32>
    %22 = arith.maximumf %15, %21 : vector<128x128xf32>
    %23 = arith.truncf %22 : vector<128x128xf32> to vector<128x128xbf16>
    %24 = arith.index_cast %20 : i32 to index
    %c0_15 = arith.constant 0 : index
    %25 = vector.load %arg8[%24, %c0_15] : memref<256x128xbf16, #tpu.memory_space<vmem>>, vector<128x128xbf16>
    tpu.vector_store %arg8[%24, %c0_15], %23 {strides = array<i32>} : memref<256x128xbf16, #tpu.memory_space<vmem>>, vector<128x128xbf16>,
    return
  }
  func.func @transform_0(%arg0: i32, %arg1: i32, %arg2: i32) -> (i32, i32, i32) {
    %c0_i32 = arith.constant 0 : i32
    %c0_i32_0 = arith.constant 0 : i32
    %c0_i32_1 = arith.constant 0 : i32
    return %arg0, %c0_i32, %c0_i32_0 : i32, i32, i32
  }
  func.func @transform_1(%arg0: i32, %arg1: i32, %arg2: i32) -> (i32, i32, i32) {
    %c0_i32 = arith.constant 0 : i32
    %c0_i32_0 = arith.constant 0 : i32
    return %arg0, %arg2, %c0_i32 : i32, i32, i32
  }
  func.func @transform_2(%arg0: i32, %arg1: i32, %arg2: i32) -> (i32, i32, i32) {
    %c0_i32 = arith.constant 0 : i32
    %c0_i32_0 = arith.constant 0 : i32
    %c0_i32_1 = arith.constant 0 : i32
    return %arg1, %c0_i32, %c0_i32_0 : i32, i32, i32
  }
  func.func @transform_3(%arg0: i32, %arg1: i32, %arg2: i32) -> (i32, i32, i32) {
    %c0_i32 = arith.constant 0 : i32
    %c0_i32_0 = arith.constant 0 : i32
    %c0_i32_1 = arith.constant 0 : i32
    return %arg1, %c0_i32, %c0_i32_0 : i32, i32, i32
  }
  func.func @transform_4(%arg0: i32, %arg1: i32, %arg2: i32) -> (i32, i32, i32) {
    %c0_i32 = arith.constant 0 : i32
    %c0_i32_0 = arith.constant 0 : i32
    return %arg0, %arg2, %c0_i32 : i32, i32, i32
  }
}

</mosaic_0001>

<bundles_post_ra>
// kernel: tpu_custom_call.1
= control target key start
LH: loop header
LB: loop body
LE: loop exit
PB: predicated region body
PF: predicated region fallthrough
CT: control target
= control target key end

     0   :  { %s3012_s0 = inlined_call_operand.hbm [shape: bf16[2,256,128], index: 0, kind: input, shape index: {}]   ;;  %s3013_s1 = inlined_call_operand.hbm [shape: bf16[2,256,256], index: 1, kind: input, shape index: {}]   ;;  %s3014_s2 = inlined_call_operand.hbm [shape: bf16[3,128,128], index: 2, kind: input, shape index: {}]   ;;  %s3015_s3 = inlined_call_operand.vmem [shape: f32[3,1,128], index: 3, kind: input, shape index: {}]   ;;  %s3016_s4 = inlined_call_operand.hbm [shape: f32[2,256,128], index: 4, kind: output, shape index: {}]  }
   0x1   :  { %3035 = sst [smem:[#allocation28_spill]] %s3012_s0 }
   0x2   :  { %3036 = sst [smem:[#allocation29_spill]] %s3013_s1 }
   0x3   :  { %3037 = sst [smem:[#allocation30_spill]] %s3014_s2 }
   0x4   :  { %3038 = sst [smem:[#allocation31_spill]] %s3015_s3 }
   0x5   :  { %3039 = sst [smem:[#allocation32_spill]] %s3016_s4 }
   0x6   :  { %9 = vsyncpa [#allocation5], 0 }
   0x7   :  { %11 = vsyncpa [#allocation5 + $0x1], 0 }
   0x8   :  { %12 = vsyncpa [#allocation8], 0 }
   0x9   :  { %14 = vsyncpa [#allocation8 + $0x1], 0 }
   0xa   :  { %15 = vsyncpa [#allocation6], 0 }
   0xb   :  { %17 = vsyncpa [#allocation6 + $0x1], 0  ;;  %s2539_s15 = smov 0   ;;  %s2541_s16 = smov 0  }
   0xc   :  { %s2543_s17 = smov 0   ;;  %s2545_s18 = smov 0  }
   0xd   :  { %s2547_s19 = smov 0   ;;  %s2549_s20 = smov 0  }
   0xe   :  { %s2551_s21 = smov 0   ;;  %s2553_s22 = smov 0  }
   0xf   :  { %s2555_s23 = smov 0   ;;  %s2557_s24 = smov 0  }
  0x10   :  { %s2559_s25 = smov 0   ;;  %s2561_s26 = smov 0  }
  0x11   :  { %s2563_s27 = smov 0   ;;  %s2565_s28 = smov 0  }
  0x12   :  { %s2567_s29 = smov 0   ;;  %s2569_s30 = smov 0  }
  0x13 LB: > { %3040 = sst [smem:[#allocation15_spill]] %s2442_s15  ;;  %s2620_s5 = sadd.s32 4294967295, %s2502_s30   ;;  %s2502_s30 = sphi %s2569_s30, %s23_s30   ;;  %s2498_s29 = sphi %s2567_s29, %s3108_s29   ;;  %s2494_s28 = sphi %s2565_s28, %s3094_s28   ;;  %s2490_s27 = sphi %s2563_s27, %s3107_s27   ;;  %s2486_s26 = sphi %s2561_s26, %s3092_s26   ;;  %s2482_s25 = sphi %s2559_s25, %s3106_s25   ;;  %s2478_s24 = sphi %s2557_s24, %s3105_s24   ;;  %s2474_s23 = sphi %s2555_s23, %s3104_s23   ;;  %s2470_s22 = sphi %s2553_s22, %s3103_s22   ;;  %s2466_s21 = sphi %s2551_s21, %s3102_s21   ;;  %s2462_s20 = sphi %s2549_s20, %s3101_s20   ;;  %s2458_s19 = sphi %s2547_s19, %s3100_s19   ;;  %s2454_s18 = sphi %s2545_s18, %s3099_s18   ;;  %s2450_s17 = sphi %s2543_s17, %s3098_s17   ;;  %s2446_s16 = sphi %s2541_s16, %s3097_s16   ;;  %s2442_s15 = sphi %s2539_s15, %s3096_s15  }
  0x14   : > { %3041 = sst [smem:[#allocation16_spill]] %s2478_s24  ;;  %s1534_s6 = sadd.s32 4294967294, %s2502_s30  }
  0x15   : > { %3042 = sst [smem:[#allocation17_spill]] %s2482_s25  ;;  %s35_s7 = sadd.s32 1, %s2490_s27 }
  0x16   : > { %3043 = sst [smem:[#allocation18_spill]] %s2486_s26  ;;  %s38_s8 = sadd.s32 1, %s2494_s28 }
  0x17   : > { %3044 = sst [smem:[#allocation19_spill]] %s2494_s28  ;;  %p36_p0 = scmp.ge.s32.totalorder %s35_s7, 2 }
  0x18   : > { %3045 = sst [smem:[#allocation20_spill]] %s2498_s29  ;;  %s42_s9 = sadd.s32 1, %s2498_s29 }
  0x19   : > { %p3031_p1 = scmp.eq.s32.totalorder %s2502_s30, 0  ;;  %p3019_p2 = scmp.eq.s32.totalorder %s2620_s5, 0 }
  0x1a   : > { %s3110_s7 = smov (%p36_p0, %s35_s7), 0  ;;  %s3112_s8 = smov (!%p36_p0, %s38_s8), %s2494_s28 }
  0x1b   : > { %3046 = sst [smem:[#allocation21_spill]] %s3110_s7  ;;  %s73_s10 = ssub.s32 %s2490_s27, %s3110_s7 }
  0x1c   : > { %s77_s11 = sadd.s32 1, %s2462_s20  ;;  %p40_p3 = scmp.ge.s32.totalorder %s3112_s8, 3 }
  0x1d   : > { %p84_p4 = scmp.ne.s32.totalorder %s2462_s20, %s2458_s19  ;;  %p90_p5 = scmp.ne.s32.totalorder %s2458_s19, %s2454_s18 }
  0x1e   : > { %p168_p6 = scmp.eq.s32.totalorder %s2620_s5, 11  ;;  %s3114_s8 = smov (%p40_p3, %s3112_s8), 0 }
  0x1f   : > { %3047 = sst [smem:[#allocation22_spill]] %s3114_s8  ;;  %s3116_s9 = smov (!%p40_p3, %s42_s9), %s2498_s29 }
  0x20   : > { %p2644_p7 = por %p84_p4, %p3031_p1  ;;  %p2653_p8 = por %p90_p5, %p3019_p2 }
  0x21   : > { %p44_p9 = scmp.ge.s32.totalorder %s3116_s9, 2  ;;  %s100_s14 = ssub.s32 %s2494_s28, %s3114_s8 }
  0x22   : > { %s3049_s13 = scalar_select %p2653_p8, 1, 0 }
  0x23   : > { %p2659_p10 = scmp.eq.s32.totalorder %s100_s14, 0  ;;  %p2663_p11 = por %p168_p6, %p84_p4 }
  0x24   : > { %3050 = sst [smem:[#allocation23_spill]] %s3049_s13  ;;  %s3118_s9 = smov (%p44_p9, %s3116_s9), 0 }
  0x25   : > { %s3052_s4 = scalar_select %p2663_p11, 1, 0 }
  0x26   : > { %3054 = sst [smem:[#allocation25_spill]] %s3118_s9  ;;  %p174_p12 = scmp.eq.s32.totalorder %s1534_s6, 11 }
  0x27   : > { %3053 = sst [smem:[#allocation24_spill]] %s3052_s4  ;;  %s2671_s26 = ssub.s32 %s2498_s29, %s3118_s9 }
  0x28   : > { %p3030_p13 = scmp.lt.s32.totalorder %s2502_s30, 12  ;;  %p47_p0 = scmp.eq.s32.totalorder %s2671_s26, 0 }
  0x29   : > { %s74_s14 = sor.u32 %s73_s10, %s2671_s26  ;;  %p2679_p2 = por %p174_p12, %p90_p5 }
  0x2a   : > { %p75_p3 = scmp.eq.s32.totalorder %s74_s14, 0  ;;  %s215_s4 = sand.u32 1, %s2502_s30  }
  0x2b   : > { %s3055_s8 = scalar_select %p2679_p2, 1, 0 }
  0x2c   : > { %s217_s3 = sand.u32 1, %s2462_s20   ;;  %s1668_s9 = sshll.u32 %s2490_s27, 5 }
  0x2d   : > { %3056 = sst [smem:[#allocation26_spill]] %s3055_s8  ;;  %s1540_s6 = sshll.u32 %s217_s3, 7 }
  0x2e   : > { %s2686_s24 = scalar_select %p75_p3, %s2462_s20, %s77_s11  }
  0x2f   : > { %s1543_s25 = sshll.u32 %s2498_s29, 6  ;;  %s219_s13 = scalar_lea.vmem [#allocation7], %s1540_s6 }
  0x30   : > { %3057 = sst [smem:[#allocation27_spill]] %s2686_s24  ;;  %s229_s2 = sshll.u32 %s219_s13, 4  ;;  %s230_s2 = int_to_ptr.vmem [resolvable:$true] %s229_s2 }
  0x31   : > { %s226_s28 = sadd.s32 %s1668_s9, %s1543_s25  ;;  %p2694_p4 = pnand %p3030_p13, %p2644_p7 }
  0x32   : > { %s1544_s15 = sshll.u32 %s226_s28, 6  ;;  %s3059_s1 = sld [smem:[#allocation29_spill]] }
  0x33   : > { %s2701_s24 = scalar_lea.sflag [#allocation8], %s215_s4  ;;  %p2252_p5 = pneg %p2694_p4 }
  0x34   : > { %s2263_s3 = scalar_lea.vmem %s230_s2, 2048  ;;  %s2504_s25 = smov [#allocation7]  }
  0x35   : > { %p2264_p6 = scmp.ne.s32.totalorder %s230_s2, %s2263_s3  ;;  %s2268_s28 = sshll.u32 %s2504_s25, 4  ;;  %s2269_s28 = int_to_ptr.vmem [resolvable:$false] %s2268_s28 }
  0x36   : > { %s2270_s9 = scalar_lea.vmem %s2269_s28, 4096  ;;  %p2271_p7 = scmp.lt.s32.totalorder %s230_s2, %s2269_s28 }
  0x37   : > { %p2266_p9 = pnand %p2264_p6, %p2252_p5  ;;  %p2272_p3 = scmp.lt.s32.totalorder %s2270_s9, %s2263_s3 }
  0x38   : > { %s228_s11 = scalar_lea.hbm %s3059_s1, %s1544_s15 }
  0x39   : > { %p2267_p12 = pneg %p2266_p9  ;;  %p2273_p13 = por %p2272_p3, %p2271_p7 }
  0x3b   : > { %p2274_p1 = pnand %p2273_p13, %p2267_p12 }
  0x3d   : > { %2277 = shalt.err (!%p2274_p1)
}
  0x3e   : > { %s2505_s8 = smov 128   ;;  %s2506_s4 = smov 8  }
  0x3f   : > { %2042 = dma.hbm_to_vmem [thread:$0]  (!%p2694_p4), %s228_s11, 2048, %s230_s2, %s2701_s24, %s2505_s8, %s2505_s8, %s2506_s4  }
  0x40   : > { %p1548_p1 = scmp.ge.s32.totalorder %s2502_s30, 1  ;;  %p264_p13 = scmp.lt.s32.totalorder %s2502_s30, 13 }
  0x41   : > { %s49_s12 = sadd.s32 1, %s2474_s23  ;;  %p56_p6 = scmp.ne.s32.totalorder %s2474_s23, %s2470_s22 }
  0x42   : > { %p2710_p5 = pnand %p1548_p1, %p264_p13  ;;  %p62_p9 = scmp.ne.s32.totalorder %s2470_s22, %s2466_s21 }
  0x43   : > { %s2718_s13 = scalar_select %p47_p0, %s2474_s23, %s49_s12  }
  0x44   : > { %s194_s6 = sand.u32 1, %s2474_s23   ;;  %s1667_s14 = sshll.u32 %s2498_s29, 11 }
  0x45   : > { %p3061_p12 = scmp.eq.s32.totalorder %s2502_s30, 0  ;;  %p3062_p3 = scmp.eq.s32.totalorder %s2620_s5, 0 }
  0x46   : > { %s1537_s10 = sshll.u32 %s194_s6, 7  ;;  %s3064_s0 = sld [smem:[#allocation28_spill]] }
  0x47   : > { %p58_p7 = por %p3061_p12, %p56_p6  ;;  %p2730_p2 = por %p3062_p3, %p62_p9 }
  0x48   : > { %s198_s28 = scalar_lea.vmem [#allocation4], %s1537_s10  ;;  %p3065_p0 = scmp.lt.s32.totalorder %s2502_s30, 12 }
  0x49   : > { %s205_s26 = sshll.u32 %s198_s28, 4  ;;  %s195_s21 = scalar_lea.sflag [#allocation5], %s194_s6  ;;  %s206_s26 = int_to_ptr.vmem [resolvable:$true] %s205_s26 }
  0x4a   : > { %p2739_p4 = pnand %p3065_p0, %p58_p7  ;;  %s2291_s8 = scalar_lea.vmem %s206_s26, 2048 }
  0x4b   : > { %p2292_p13 = scmp.ne.s32.totalorder %s206_s26, %s2291_s8  ;;  %s2507_s4 = smov [#allocation4]  }
  0x4c   : > { %s204_s25 = scalar_lea.hbm %s3064_s0, %s1667_s14  ;;  %p2280_p1 = pneg %p2739_p4 }
  0x4d   : > { %s2296_s12 = sshll.u32 %s2507_s4, 4  ;;  %s2297_s12 = int_to_ptr.vmem [resolvable:$false] %s2296_s12 }
  0x4e   : > { %p2294_p6 = pnand %p2292_p13, %p2280_p1  ;;  %s2298_s14 = scalar_lea.vmem %s2297_s12, 4096 }
  0x4f   : > { %p2299_p12 = scmp.lt.s32.totalorder %s206_s26, %s2297_s12  ;;  %p2300_p3 = scmp.lt.s32.totalorder %s2298_s14, %s2291_s8 }
  0x50   : > { %p2295_p9 = pneg %p2294_p6 }
  0x51   : > { %p2301_p11 = por %p2300_p3, %p2299_p12 }
  0x53   : > { %p2302_p7 = pnand %p2301_p11, %p2295_p9 }
  0x55   : > { %2305 = shalt.err (!%p2302_p7)
}
  0x56   : > { %s2508_s10 = smov 64   ;;  %s3067_s6 = sld [smem:[#allocation15_spill]] }
  0x57   : > { %s3068_s11 = sld [smem:[#allocation19_spill]]  ;;  %s2509_s3 = smov 4  }
  0x58   : > { %2039 = dma.hbm_to_vmem [thread:$0]  (!%p2739_p4), %s204_s25, 2048, %s206_s26, %s195_s21, %s2508_s10, %s2508_s10, %s2509_s3  }
  0x59   : > { %s103_s28 = sadd.s32 1, %s2450_s17  ;;  %p110_p11 = scmp.ne.s32.totalorder %s2450_s17, %s2446_s16 }
  0x5a   : > { %s2756_s8 = scalar_select %p2659_p10, %s2450_s17, %s103_s28  }
  0x5b   : > { %p3069_p0 = scmp.eq.s32.totalorder %s2502_s30, 0  ;;  %s241_s4 = sand.u32 1, %s2450_s17  }
  0x5c   : > { %p116_p13 = scmp.ne.s32.totalorder %s2446_s16, %s3067_s6  ;;  %p3070_p6 = scmp.eq.s32.totalorder %s2620_s5, 0 }
  0x5d   : > { %p112_p1 = por %p110_p11, %p3069_p0  ;;  %s1669_s12 = sshll.u32 %s3068_s11, 10 }
  0x5e   : > { %p2766_p9 = por %p116_p13, %p3070_p6  ;;  %s1545_s9 = sshll.u32 %s241_s4, 6 }
  0x5f   : > { %s3072_s29 = sld [smem:[#allocation30_spill]]  ;;  %s243_s26 = scalar_lea.vmem [#allocation9], %s1545_s9 }
  0x60   : > { %s3071_s14 = scalar_select %p2766_p9, 1, 0 }
  0x61   : > { %s250_s21 = sshll.u32 %s243_s26, 4  ;;  %p3073_p4 = scmp.lt.s32.totalorder %s2502_s30, 12  ;;  %s251_s21 = int_to_ptr.vmem [resolvable:$true] %s250_s21 }
  0x62   : > { %s2319_s6 = scalar_lea.vmem %s251_s21, 1024  ;;  %s2510_s11 = smov [#allocation9]  }
  0x63   : > { %p2775_p10 = pnand %p3073_p4, %p112_p1  ;;  %p2320_p3 = scmp.ne.s32.totalorder %s251_s21, %s2319_s6 }
  0x64   : > { %s2324_s28 = sshll.u32 %s2510_s11, 4  ;;  %s2325_s28 = int_to_ptr.vmem [resolvable:$false] %s2324_s28 }
  0x65   : > { %s249_s25 = scalar_lea.hbm %s3072_s29, %s1669_s12  ;;  %p2308_p12 = pneg %p2775_p10 }
  0x66   : > { %s2326_s0 = scalar_lea.vmem %s2325_s28, 2048  ;;  %p2327_p0 = scmp.lt.s32.totalorder %s251_s21, %s2325_s28 }
  0x67   : > { %p2322_p7 = pnand %p2320_p3, %p2308_p12  ;;  %p2328_p13 = scmp.lt.s32.totalorder %s2326_s0, %s2319_s6 }
  0x69   : > { %p2323_p11 = pneg %p2322_p7  ;;  %p2329_p6 = por %p2328_p13, %p2327_p0 }
  0x6b   : > { %p2330_p9 = pnand %p2329_p6, %p2323_p11 }
  0x6d   : > { %2333 = shalt.err (!%p2330_p9)
}
  0x6e   : > { %2045 = dma.hbm_to_vmem [thread:$0]  (!%p2775_p10), %s249_s25, 1024, %s251_s21, %s2701_s24, %s2508_s10, %s2508_s10, %s2509_s3  }
  0x6f   : > { %268 = sbr.rel (%p2710_p5) target bundleno = 701 (0x2bd), region = 36  ;;  %s270_s1 = sand.u32 (!%p2710_p5), 1, %s2470_s22  }
  0x70   : > { %s1549_s29 = sshll.u32 (!%p2710_p5), %s270_s1, 7  ;;  %s271_s4 = scalar_lea.sflag (!%p2710_p5), [#allocation5], %s270_s1 }
  0x71   : > { %s2790_s12 = scalar_lea.vmem (!%p2710_p5), [#allocation4], %s1549_s29 }
  0x74   : > { %2425 = dma.done.wait (%p2730_p2), %s271_s4, 2048  }
  0x75   : > { %2427 = vsyncadd (%p2730_p2), %s271_s4, 4294965248  ;;  %s279_s24 = sand.u32 1, %s2620_s5   ;;  %s281_s10 = sand.u32 1, %s2458_s19  }
  0x76   : > { %s1550_s15 = sshll.u32 %s281_s10, 7  ;;  %s280_s3 = scalar_lea.sflag [#allocation8], %s279_s24 }
  0x77   : > { %s2800_s25 = scalar_lea.vmem [#allocation7], %s1550_s15 }
  0x78   : > { %2429 = dma.done.wait (%p2653_p8), %s280_s3, 2048  }
  0x79   : > { %2431 = vsyncadd (%p2653_p8), %s280_s3, 4294965248  ;;  %s290_s2 = sand.u32 1, %s2446_s16   ;;  %p3076_p2 = scmp.ne.s32.totalorder %s3071_s14, 0 }
  0x7a   : > { %s1551_s26 = sshll.u32 %s290_s2, 6 }
  0x7b   : > { %s2807_s21 = scalar_lea.vmem [#allocation9], %s1551_s26 }
  0x7c   : > { %2433 = dma.done.wait (%p3076_p2), %s280_s3, 1024  }
  0x7d   : > { %2435 = vsyncadd (%p3076_p2), %s280_s3, 4294966272  ;;  %s3077_s5 = sld [smem:[#allocation17_spill]]  ;;  %s2823_s1 = scalar_lea.vmem [#allocation10], %s1550_s15 }
  0x7e   : > { %s3078_s7 = sld [smem:[#allocation16_spill]] }
  0x7f   : > { %s3079_s28 = sld [smem:[#allocation31_spill]] }
  0x83   : > { %p331_p5 = scmp.lt.s32.totalorder %s3077_s5, 2  ;;  %p336_p1 = scmp.eq.s32.totalorder %s3077_s5, 0 }
  0x84   : > { %p337_p9 = scmp.eq.s32.totalorder %s3078_s7, 0 }
  0x85   : > { %s3120_s5 = smov (!%p331_p5, %s3077_s5), 2 }
  0x86   : > { %p338_p8 = pnand %p337_p9, %p336_p1  ;;  %s333_s0 = scalar_lea.vmem %s3079_s28, %s3120_s5 }
  0x88   : > { %341 = sbr.rel (%p338_p8) target bundleno = 150 (0x96), region = 52 }
  0x8d   : > { %v342_v0 = vld [vmem:[%s2790_s12] sm:$0xff]   ;;  %v344_v1 = vld [vmem:[%s2790_s12 + $0x8] sm:$0xff]   ;;  %v346_v2 = vld [vmem:[%s2790_s12 + $0x10] sm:$0xff]  }
  0x8e   : > { %374 = vst [vmem:[#allocation2] sm:$0xff] %v342_v0   ;;  %376 = vst [vmem:[#allocation2 + $0x8] sm:$0xff] %v344_v1   ;;  %v348_v3 = vld [vmem:[%s2790_s12 + $0x18] sm:$0xff]   ;;  %v350_v4 = vld [vmem:[%s2790_s12 + $0x20] sm:$0xff]  }
  0x8f   : > { %378 = vst [vmem:[#allocation2 + $0x10] sm:$0xff] %v346_v2   ;;  %v352_v5 = vld [vmem:[%s2790_s12 + $0x28] sm:$0xff]   ;;  %380 = vst [vmem:[#allocation2 + $0x18] sm:$0xff] %v348_v3   ;;  %v354_v6 = vld [vmem:[%s2790_s12 + $0x30] sm:$0xff]  }
  0x90   : > { %382 = vst [vmem:[#allocation2 + $0x20] sm:$0xff] %v350_v4   ;;  %384 = vst [vmem:[#allocation2 + $0x28] sm:$0xff] %v352_v5   ;;  %v356_v7 = vld [vmem:[%s2790_s12 + $0x38] sm:$0xff]   ;;  %v358_v8 = vld [vmem:[%s2790_s12 + $0x40] sm:$0xff]  }
  0x91   : > { %386 = vst [vmem:[#allocation2 + $0x30] sm:$0xff] %v354_v6   ;;  %388 = vst [vmem:[#allocation2 + $0x38] sm:$0xff] %v356_v7   ;;  %v360_v9 = vld [vmem:[%s2790_s12 + $0x48] sm:$0xff]   ;;  %v362_v10 = vld [vmem:[%s2790_s12 + $0x50] sm:$0xff]  }
  0x92   : > { %390 = vst [vmem:[#allocation2 + $0x40] sm:$0xff] %v358_v8   ;;  %v364_v11 = vld [vmem:[%s2790_s12 + $0x58] sm:$0xff]   ;;  %392 = vst [vmem:[#allocation2 + $0x48] sm:$0xff] %v360_v9   ;;  %v366_v12 = vld [vmem:[%s2790_s12 + $0x60] sm:$0xff]  }
  0x93   : > { %394 = vst [vmem:[#allocation2 + $0x50] sm:$0xff] %v362_v10   ;;  %396 = vst [vmem:[#allocation2 + $0x58] sm:$0xff] %v364_v11   ;;  %v368_v13 = vld [vmem:[%s2790_s12 + $0x68] sm:$0xff]   ;;  %v370_v14 = vld [vmem:[%s2790_s12 + $0x70] sm:$0xff]  }
  0x94   : > { %398 = vst [vmem:[#allocation2 + $0x60] sm:$0xff] %v366_v12   ;;  %400 = vst [vmem:[#allocation2 + $0x68] sm:$0xff] %v368_v13   ;;  %v372_v15 = vld [vmem:[%s2790_s12 + $0x78] sm:$0xff]  }
  0x95   : > { %402 = vst [vmem:[#allocation2 + $0x70] sm:$0xff] %v370_v14   ;;  %404 = vst [vmem:[#allocation2 + $0x78] sm:$0xff] %v372_v15  }
  0x96 PF: > { %s3080_s14 = sld [smem:[#allocation16_spill]] }
  0x9c   : > { %p1553_p4 = scmp.ne.s32.totalorder %s3080_s14, 0 }
  0x9e   : > { %408 = sbr.rel (%p1553_p4) target bundleno = 422 (0x1a6), region = 56 }
  0xa3   : > { %v2186_v16 = vld [vmem:[%s2807_s21 + $0x38] sm:$0xff]   ;;  %v2187_v17 = vld [vmem:[%s2807_s21 + $0x30] sm:$0xff]   ;;  %v2188_v18 = vld [vmem:[%s2807_s21 + $0x28] sm:$0xff]  }
  0xa4   : > { %1948 = vmatprep.subr.bf16.mxu0 %v2186_v16  ;;  %1996 = vmatprep.subr.bf16.mxu1 %v2186_v16  ;;  %v2189_v19 = vld [vmem:[%s2807_s21 + $0x20] sm:$0xff]   ;;  %v2190_v22 = vld [vmem:[%s2807_s21 + $0x18] sm:$0xff]   ;;  %v2191_v23 = vld [vmem:[%s2807_s21 + $0x10] sm:$0xff]  }
  0xa5   : > { %1949 = vmatpush3.bf16.msra.mxu0 %v2186_v16  ;;  %2004 = vmatpush3.bf16.msra.mxu1 %v2186_v16  ;;  %v2194_v20 = vld [vmem:[#allocation2] sm:$0xff]   ;;  %v2192_v24 = vld [vmem:[%s2807_s21 + $0x8] sm:$0xff]   ;;  %v2198_v28 = vld [vmem:[#allocation2 + $0x10] sm:$0xff]  }
  0xa6   : > { %1950 = vmatprep.subr.bf16.mxu0 %v2187_v17  ;;  %1997 = vmatprep.subr.bf16.mxu1 %v2187_v17  ;;  %v2195_v21 = vld [vmem:[#allocation2 + $0x40] sm:$0xff]   ;;  %v2196_v26 = vld [vmem:[#allocation2 + $0x8] sm:$0xff]   ;;  %v2199_v29 = vld [vmem:[#allocation2 + $0x50] sm:$0xff]  }
  0xa7   : > { %1964 = vmatprep.mubr.bf16.mxu0 %v2194_v20  ;;  %1980 = vmatprep.mubr.bf16.mxu1 %v2195_v21  ;;  %v2193_v25 = vld [vmem:[%s2807_s21] sm:$0xff]   ;;  %v2197_v27 = vld [vmem:[#allocation2 + $0x48] sm:$0xff]   ;;  %v2200_v30 = vld [vmem:[#allocation2 + $0x18] sm:$0xff]  }
  0xa8   : > { %v2201_v31 = vld [vmem:[#allocation2 + $0x58] sm:$0xff]   ;;  %v2202_v32 = vld [vmem:[#allocation2 + $0x20] sm:$0xff]   ;;  %v2204_v34 = vld [vmem:[#allocation2 + $0x28] sm:$0xff]  }
  0xa9   : > { %1951 = vmatpush3.bf16.msra.mxu0 %v2187_v17  ;;  %2005 = vmatpush3.bf16.msra.mxu1 %v2187_v17  ;;  %v2203_v33 = vld [vmem:[#allocation2 + $0x60] sm:$0xff]   ;;  %v2205_v35 = vld [vmem:[#allocation2 + $0x68] sm:$0xff]   ;;  %v2206_v36 = vld [vmem:[#allocation2 + $0x30] sm:$0xff]  }
  0xaa   : > { %1952 = vmatprep.subr.bf16.mxu0 %v2188_v18  ;;  %1998 = vmatprep.subr.bf16.mxu1 %v2188_v18  ;;  %v2207_v37 = vld [vmem:[#allocation2 + $0x70] sm:$0xff]   ;;  %v2208_v38 = vld [vmem:[#allocation2 + $0x38] sm:$0xff]  }
  0xab   : > { %v2209_v39 = vld [vmem:[#allocation2 + $0x78] sm:$0xff]  }
  0xad   : > { %1953 = vmatpush3.bf16.msra.mxu0 %v2188_v18  ;;  %2006 = vmatpush3.bf16.msra.mxu1 %v2188_v18 }
  0xae   : > { %1954 = vmatprep.subr.bf16.mxu0 %v2189_v19  ;;  %1999 = vmatprep.subr.bf16.mxu1 %v2189_v19 }
  0xb1   : > { %1955 = vmatpush3.bf16.msra.mxu0 %v2189_v19  ;;  %2007 = vmatpush3.bf16.msra.mxu1 %v2189_v19 }
  0xb2   : > { %1956 = vmatprep.subr.bf16.mxu0 %v2190_v22  ;;  %2000 = vmatprep.subr.bf16.mxu1 %v2190_v22 }
  0xb5   : > { %1957 = vmatpush3.bf16.msra.mxu0 %v2190_v22  ;;  %2008 = vmatpush3.bf16.msra.mxu1 %v2190_v22 }
  0xb6   : > { %1958 = vmatprep.subr.bf16.mxu0 %v2191_v23  ;;  %2001 = vmatprep.subr.bf16.mxu1 %v2191_v23 }
  0xb9   : > { %1959 = vmatpush3.bf16.msra.mxu0 %v2191_v23  ;;  %2009 = vmatpush3.bf16.msra.mxu1 %v2191_v23 }
  0xba   : > { %1960 = vmatprep.subr.bf16.mxu0 %v2192_v24  ;;  %2002 = vmatprep.subr.bf16.mxu1 %v2192_v24 }
  0xbd   : > { %1961 = vmatpush3.bf16.msra.mxu0 %v2192_v24  ;;  %2010 = vmatpush3.bf16.msra.mxu1 %v2192_v24 }
  0xbe   : > { %1962 = vmatprep.subr.bf16.mxu0 %v2193_v25  ;;  %2003 = vmatprep.subr.bf16.mxu1 %v2193_v25 }
  0xc1   : > { %1963 = vmatpush3.bf16.msra.mxu0 %v2193_v25  ;;  %2011 = vmatpush3.bf16.msra.mxu1 %v2193_v25 }
  0xc4   : > { %1965 = vmatmul.mubr.bf16.vlgmr.msra.gmra.mxu0 %v2196_v26  ;;  %1981 = vmatmul.mubr.bf16.vlgmr.msra.gmra.mxu1 %v2197_v27 }
  0xc5   : > { %1968 = vmatprep.mubr.bf16.mxu0 %v2198_v28  ;;  %1984 = vmatprep.mubr.bf16.mxu1 %v2199_v29 }
  0xcc   : > { %1969 = vmatmul.mubr.bf16.gmra.mxu0 %v2200_v30  ;;  %1985 = vmatmul.mubr.bf16.gmra.mxu1 %v2201_v31 }
  0xcd   : > { %1972 = vmatprep.mubr.bf16.mxu0 %v2202_v32  ;;  %1988 = vmatprep.mubr.bf16.mxu1 %v2203_v33 }
  0xd4   : > { %1973 = vmatmul.mubr.bf16.gmra.mxu0 %v2204_v34  ;;  %1989 = vmatmul.mubr.bf16.gmra.mxu1 %v2205_v35 }
  0xd5   : > { %1976 = vmatprep.mubr.bf16.mxu0 %v2206_v36  ;;  %1992 = vmatprep.mubr.bf16.mxu1 %v2207_v37 }
  0xdc   : > { %1977 = vmatmul.mubr.bf16.gmra.mxu0 %v2208_v38  ;;  %1993 = vmatmul.mubr.bf16.gmra.mxu1 %v2209_v39 }
 0x184   : > { %v1966_v40 = vpop.f32.mrf.mxu0  ;;  %v1982_v41 = vpop.f32.mrf.mxu1 }
 0x186   : > { %v635_v42 = vpop.f32.mrf.mxu0  ;;  %v699_v43 = vpop.f32.mrf.mxu1 }
 0x188   : > { %v1967_v44 = vpop.f32.mrf.mxu0  ;;  %v1983_v45 = vpop.f32.mrf.mxu1 }
 0x189   : > { %v1726_v46 = vpack.c.bf16 %v1967_v44, %v1966_v40  ;;  %v1766_v47 = vpack.c.bf16 %v1983_v45, %v1982_v41 }
 0x18a   : > { %v638_v48 = vpop.f32.mrf.mxu0  ;;  %v702_v49 = vpop.f32.mrf.mxu1 }
 0x18b   : > { %1838 = vst [vmem:[#allocation3 + $0x8] sm:$0xff] %v1726_v46   ;;  %1846 = vst [vmem:[#allocation3 + $0x48] sm:$0xff] %v1766_v47   ;;  %v1721_v50 = vpack.c.bf16 %v638_v48, %v635_v42  ;;  %v1761_v51 = vpack.c.bf16 %v702_v49, %v699_v43 }
 0x18c   : > { %v1970_v52 = vpop.f32.mrf.mxu0  ;;  %v1986_v53 = vpop.f32.mrf.mxu1 }
 0x18d   : > { %1722 = vst [vmem:[#allocation3] sm:$0xff] %v1721_v50   ;;  %1845 = vst [vmem:[#allocation3 + $0x40] sm:$0xff] %v1761_v51  }
 0x18e   : > { %v651_v54 = vpop.f32.mrf.mxu0  ;;  %v715_v55 = vpop.f32.mrf.mxu1 }
 0x190   : > { %v1971_v56 = vpop.f32.mrf.mxu0  ;;  %v1987_v57 = vpop.f32.mrf.mxu1 }
 0x191   : > { %v1736_v58 = vpack.c.bf16 %v1971_v56, %v1970_v52  ;;  %v1776_v59 = vpack.c.bf16 %v1987_v57, %v1986_v53 }
 0x192   : > { %v654_v60 = vpop.f32.mrf.mxu0  ;;  %v718_v61 = vpop.f32.mrf.mxu1 }
 0x193   : > { %1840 = vst [vmem:[#allocation3 + $0x18] sm:$0xff] %v1736_v58   ;;  %1848 = vst [vmem:[#allocation3 + $0x58] sm:$0xff] %v1776_v59   ;;  %v1731_v62 = vpack.c.bf16 %v654_v60, %v651_v54  ;;  %v1771_v63 = vpack.c.bf16 %v718_v61, %v715_v55 }
 0x194   : > { %v1974_v0 = vpop.f32.mrf.mxu0  ;;  %v1990_v1 = vpop.f32.mrf.mxu1 }
 0x195   : > { %1839 = vst [vmem:[#allocation3 + $0x10] sm:$0xff] %v1731_v62   ;;  %1847 = vst [vmem:[#allocation3 + $0x50] sm:$0xff] %v1771_v63  }
 0x196   : > { %v667_v2 = vpop.f32.mrf.mxu0  ;;  %v731_v3 = vpop.f32.mrf.mxu1 }
 0x198   : > { %v1975_v4 = vpop.f32.mrf.mxu0  ;;  %v1991_v5 = vpop.f32.mrf.mxu1 }
 0x199   : > { %v1746_v6 = vpack.c.bf16 %v1975_v4, %v1974_v0  ;;  %v1786_v7 = vpack.c.bf16 %v1991_v5, %v1990_v1 }
 0x19a   : > { %v670_v8 = vpop.f32.mrf.mxu0  ;;  %v734_v9 = vpop.f32.mrf.mxu1 }
 0x19b   : > { %1842 = vst [vmem:[#allocation3 + $0x28] sm:$0xff] %v1746_v6   ;;  %1850 = vst [vmem:[#allocation3 + $0x68] sm:$0xff] %v1786_v7   ;;  %v1741_v10 = vpack.c.bf16 %v670_v8, %v667_v2  ;;  %v1781_v11 = vpack.c.bf16 %v734_v9, %v731_v3 }
 0x19c   : > { %v1978_v12 = vpop.f32.mrf.mxu0  ;;  %v1994_v13 = vpop.f32.mrf.mxu1 }
 0x19d   : > { %1841 = vst [vmem:[#allocation3 + $0x20] sm:$0xff] %v1741_v10   ;;  %1849 = vst [vmem:[#allocation3 + $0x60] sm:$0xff] %v1781_v11  }
 0x19e   : > { %v683_v14 = vpop.f32.mrf.mxu0  ;;  %v747_v15 = vpop.f32.mrf.mxu1 }
 0x1a0   : > { %v1979_v16 = vpop.f32.mrf.mxu0  ;;  %v1995_v17 = vpop.f32.mrf.mxu1 }
 0x1a1   : > { %v1756_v18 = vpack.c.bf16 %v1979_v16, %v1978_v12  ;;  %v1796_v19 = vpack.c.bf16 %v1995_v17, %v1994_v13 }
 0x1a2   : > { %v686_v20 = vpop.f32.mrf.mxu0  ;;  %v750_v21 = vpop.f32.mrf.mxu1 }
 0x1a3   : > { %1844 = vst [vmem:[#allocation3 + $0x38] sm:$0xff] %v1756_v18   ;;  %1852 = vst [vmem:[#allocation3 + $0x78] sm:$0xff] %v1796_v19   ;;  %v1751_v22 = vpack.c.bf16 %v686_v20, %v683_v14  ;;  %v1791_v23 = vpack.c.bf16 %v750_v21, %v747_v15 }
 0x1a5   : > { %1843 = vst [vmem:[#allocation3 + $0x30] sm:$0xff] %v1751_v22   ;;  %1851 = vst [vmem:[#allocation3 + $0x70] sm:$0xff] %v1791_v23  }
 0x1a6 PF: > { %v2214_v28 = vld [vmem:[#allocation3 + $0x68] sm:$0xff]   ;;  %v2216_v30 = vld [vmem:[#allocation3 + $0x60] sm:$0xff]   ;;  %v2218_v32 = vld [vmem:[#allocation3 + $0x58] sm:$0xff]   ;;  %s3081_s29 = sld [smem:[#allocation16_spill]]  ;;  %s1383_s6 = sshll.u32 %s2823_s1, 4  ;;  %s2921_s6 = int_to_ptr.vmem [resolvable:$true] %s1383_s6 }
 0x1a7   : > { %v2215_v29 = vld [vmem:[#allocation3 + $0x28] sm:$0xff]   ;;  %v2217_v31 = vld [vmem:[#allocation3 + $0x20] sm:$0xff]   ;;  %v2219_v33 = vld [vmem:[#allocation3 + $0x18] sm:$0xff]   ;;  %s3083_s2 = sld [smem:[#allocation18_spill]]  ;;  %s2929_s4 = scalar_lea.sflag [#allocation6], %s281_s10 }
 0x1a8   : > { %v2220_v34 = vld [vmem:[#allocation3 + $0x50] sm:$0xff]   ;;  %v2228_v35 = vld [vmem:[%s2800_s25 + $0x4] ss:$8 sps:$4 sm:$0xff]   ;;  %v2226_v42 = vld [vmem:[%s2800_s25] ss:$8 sps:$4 sm:$0xff]   ;;  %s3084_s11 = sld [smem:[#allocation24_spill]] }
 0x1a9   : > { %v2231_v36 = vld [vmem:[%s2800_s25 + $0x44] ss:$8 sps:$4 sm:$0xff]   ;;  %v2221_v37 = vld [vmem:[#allocation3 + $0x10] sm:$0xff]   ;;  %1185 = vmatprep.mubr.bf16.mxu0 %v2228_v35  ;;  %v2229_v43 = vld [vmem:[%s2800_s25 + $0x40] ss:$8 sps:$4 sm:$0xff]   ;;  %s3085_s14 = sld [smem:[#allocation32_spill]] }
 0x1aa   : > { %v2210_v24 = vld [vmem:[#allocation3 + $0x78] sm:$0xff]   ;;  %v2222_v38 = vld [vmem:[#allocation3 + $0x48] sm:$0xff]   ;;  %1217 = vmatprep.mubr.bf16.mxu1 %v2231_v36  ;;  %v2224_v40 = vld [vmem:[#allocation3 + $0x40] sm:$0xff]   ;;  %s2334_s12 = scalar_lea.vmem %s2921_s6, 2048  ;;  %s2511_s9 = smov [#allocation10]  }
 0x1ab   : > { %v2211_v25 = vld [vmem:[#allocation3 + $0x38] sm:$0xff]   ;;  %1884 = vmatprep.subr.bf16.mxu0 %v2210_v24  ;;  %2012 = vmatprep.subr.bf16.mxu1 %v2210_v24  ;;  %v2223_v39 = vld [vmem:[#allocation3 + $0x8] sm:$0xff]   ;;  %v2225_v41 = vld [vmem:[#allocation3] sm:$0xff]   ;;  %p2335_p10 = scmp.ne.s32.totalorder %s2921_s6, %s2334_s12 }
 0x1ac   : > { %v2212_v26 = vld [vmem:[#allocation3 + $0x70] sm:$0xff]   ;;  %1885 = vmatpush3.bf16.msra.mxu0 %v2211_v25  ;;  %2020 = vmatpush3.bf16.msra.mxu1 %v2211_v25  ;;  %v2238_v48 = vld [vmem:[%s2800_s25 + $0x24] ss:$8 sps:$4 sm:$0xff]   ;;  %v2242_v50 = vld [vmem:[%s2800_s25 + $0x20] ss:$8 sps:$4 sm:$0xff]   ;;  %s1643_s24 = sshll.u32 %s3081_s29, 7 }
 0x1ad   : > { %v2213_v27 = vld [vmem:[#allocation3 + $0x30] sm:$0xff]   ;;  %1886 = vmatprep.subr.bf16.mxu0 %v2212_v26  ;;  %2013 = vmatprep.subr.bf16.mxu1 %v2212_v26  ;;  %v2240_v49 = vld [vmem:[%s2800_s25 + $0x64] ss:$8 sps:$4 sm:$0xff]   ;;  %v2243_v51 = vld [vmem:[%s2800_s25 + $0x60] ss:$8 sps:$4 sm:$0xff]   ;;  %s2876_s15 = sshra.s32 %s1643_s24, 3 }
 0x1ae   : > { %v2232_v44 = vld [vmem:[%s2800_s25 + $0x14] ss:$8 sps:$4 sm:$0xff]   ;;  %v2236_v46 = vld [vmem:[%s2800_s25 + $0x10] ss:$8 sps:$4 sm:$0xff]   ;;  %v2871_v58 = vld [vmem:[%s333_s0] ss:$0 sm:$0xff] }
 0x1af   : > { %v2234_v45 = vld [vmem:[%s2800_s25 + $0x54] ss:$8 sps:$4 sm:$0xff]   ;;  %v2237_v47 = vld [vmem:[%s2800_s25 + $0x50] ss:$8 sps:$4 sm:$0xff]   ;;  %s1660_s3 = sshll.u32 %s2876_s15, 2  ;;  %s1662_s26 = sshll.u32 %s3081_s29, 4 }
 0x1b0   : > { %1887 = vmatpush3.bf16.msra.mxu0 %v2213_v27  ;;  %2021 = vmatpush3.bf16.msra.mxu1 %v2213_v27  ;;  %v2244_v52 = vld [vmem:[%s2800_s25 + $0x34] ss:$8 sps:$4 sm:$0xff]   ;;  %v2248_v54 = vld [vmem:[%s2800_s25 + $0x30] ss:$8 sps:$4 sm:$0xff]   ;;  %s1663_s21 = sshll.u32 %s3083_s2, 5  ;;  %p3086_p12 = scmp.ne.s32.totalorder %s3084_s11, 0 }
 0x1b1   : > { %1888 = vmatprep.subr.bf16.mxu0 %v2214_v28  ;;  %2014 = vmatprep.subr.bf16.mxu1 %v2214_v28  ;;  %v2246_v53 = vld [vmem:[%s2800_s25 + $0x74] ss:$8 sps:$4 sm:$0xff]   ;;  %v2249_v55 = vld [vmem:[%s2800_s25 + $0x70] ss:$8 sps:$4 sm:$0xff]   ;;  %s2887_s25 = scalar_lea.vmem [#allocation2], %s1660_s3  ;;  %s1380_s5 = sadd.s32 %s1663_s21, %s1662_s26 }
 0x1b2   : > { %s1664_s7 = sshll.u32 %s1380_s5, 7  ;;  %p2336_p3 = pnand %p2335_p10, %p3086_p12 }
 0x1b3   : > { %s2919_s29 = scalar_lea.hbm %s3085_s14, %s1664_s7  ;;  %s2338_s24 = sshll.u32 %s2511_s9, 4  ;;  %s2339_s24 = int_to_ptr.vmem [resolvable:$false] %s2338_s24 }
 0x1b4   : > { %1889 = vmatpush3.bf16.msra.mxu0 %v2215_v29  ;;  %2022 = vmatpush3.bf16.msra.mxu1 %v2215_v29  ;;  %p2337_p7 = pneg %p2336_p3  ;;  %s2340_s15 = scalar_lea.vmem %s2339_s24, 4096 }
 0x1b5   : > { %1890 = vmatprep.subr.bf16.mxu0 %v2216_v30  ;;  %2015 = vmatprep.subr.bf16.mxu1 %v2216_v30  ;;  %p2341_p11 = scmp.lt.s32.totalorder %s2921_s6, %s2339_s24  ;;  %p2342_p0 = scmp.lt.s32.totalorder %s2340_s15, %s2334_s12 }
 0x1b7   : > { %p2343_p13 = por %p2342_p0, %p2341_p11 }
 0x1b8   : > { %1891 = vmatpush3.bf16.msra.mxu0 %v2217_v31  ;;  %2023 = vmatpush3.bf16.msra.mxu1 %v2217_v31 }
 0x1b9   : > { %1892 = vmatprep.subr.bf16.mxu0 %v2218_v32  ;;  %2016 = vmatprep.subr.bf16.mxu1 %v2218_v32  ;;  %p2344_p6 = pnand %p2343_p13, %p2337_p7 }
 0x1bc   : > { %1893 = vmatpush3.bf16.msra.mxu0 %v2219_v33  ;;  %2024 = vmatpush3.bf16.msra.mxu1 %v2219_v33 }
 0x1bd   : > { %1894 = vmatprep.subr.bf16.mxu0 %v2220_v34  ;;  %2017 = vmatprep.subr.bf16.mxu1 %v2220_v34 }
 0x1c0   : > { %1895 = vmatpush3.bf16.msra.mxu0 %v2221_v37  ;;  %2025 = vmatpush3.bf16.msra.mxu1 %v2221_v37 }
 0x1c1   : > { %1896 = vmatprep.subr.bf16.mxu0 %v2222_v38  ;;  %2018 = vmatprep.subr.bf16.mxu1 %v2222_v38 }
 0x1c4   : > { %1897 = vmatpush3.bf16.msra.mxu0 %v2223_v39  ;;  %2026 = vmatpush3.bf16.msra.mxu1 %v2223_v39 }
 0x1c5   : > { %1898 = vmatprep.subr.bf16.mxu0 %v2224_v40  ;;  %2019 = vmatprep.subr.bf16.mxu1 %v2224_v40 }
 0x1c8   : > { %1899 = vmatpush3.bf16.msra.mxu0 %v2225_v41  ;;  %2027 = vmatpush3.bf16.msra.mxu1 %v2225_v41 }
 0x1cb   : > { %1186 = vmatmul.mubr.bf16.vlgmr.msra.gmra.mxu0 %v2226_v42  ;;  %1218 = vmatmul.mubr.bf16.vlgmr.msra.gmra.mxu1 %v2229_v43 }
 0x1cc   : > { %1193 = vmatprep.mubr.bf16.mxu0 %v2232_v44  ;;  %1225 = vmatprep.mubr.bf16.mxu1 %v2234_v45 }
 0x1d3   : > { %1194 = vmatmul.mubr.bf16.gmra.mxu0 %v2236_v46  ;;  %1226 = vmatmul.mubr.bf16.gmra.mxu1 %v2237_v47 }
 0x1d4   : > { %1201 = vmatprep.mubr.bf16.mxu0 %v2238_v48  ;;  %1233 = vmatprep.mubr.bf16.mxu1 %v2240_v49 }
 0x1db   : > { %1202 = vmatmul.mubr.bf16.gmra.mxu0 %v2242_v50  ;;  %1234 = vmatmul.mubr.bf16.gmra.mxu1 %v2243_v51 }
 0x1dc   : > { %1209 = vmatprep.mubr.bf16.mxu0 %v2244_v52  ;;  %1241 = vmatprep.mubr.bf16.mxu1 %v2246_v53 }
 0x1e3   : > { %1210 = vmatmul.mubr.bf16.gmra.mxu0 %v2248_v54  ;;  %1242 = vmatmul.mubr.bf16.gmra.mxu1 %v2249_v55 }
 0x28b   : > { %v1900_v56 = vpop.f32.mrf.mxu0  ;;  %v1924_v57 = vpop.f32.mrf.mxu1 }
 0x28d   : > { %v1901_v59 = vpop.f32.mrf.mxu0  ;;  %v1925_v60 = vpop.f32.mrf.mxu1 }
 0x28e   : > { %v1902_v61 = vadd.f32 %v1901_v59, %v1900_v56  ;;  %v1926_v62 = vadd.f32 %v1925_v60, %v1924_v57 }
 0x28f   : > { %v1903_v63 = vpop.f32.mrf.mxu0  ;;  %v1927_v0 = vpop.f32.mrf.mxu1 }
 0x290   : > { %v1188_v1 = vadd.f32 %v1902_v61, %v2871_v58  ;;  %v1220_v2 = vadd.f32 %v1926_v62, %v2871_v58 }
 0x291   : > { %v1904_v3 = vpop.f32.mrf.mxu0  ;;  %v1928_v4 = vpop.f32.mrf.mxu1 }
 0x292   : > { %1250 = vst [vmem:[%s2823_s1] sm:$0xff] %v1188_v1  ;;  %1258 = vst [vmem:[%s2823_s1 + $0x40] sm:$0xff] %v1220_v2  ;;  %v1905_v5 = vadd.f32 %v1904_v3, %v1903_v63  ;;  %v1929_v6 = vadd.f32 %v1928_v4, %v1927_v0  ;;  %v1267_v11 = vmax.f32 %v1188_v1, 0.0  ;;  %v1275_v12 = vmax.f32 %v1220_v2, 0.0 }
 0x293   : > { %v1906_v7 = vpop.f32.mrf.mxu0  ;;  %v1930_v8 = vpop.f32.mrf.mxu1 }
 0x294   : > { %v1191_v9 = vadd.f32 %v1905_v5, %v2871_v58  ;;  %v1223_v10 = vadd.f32 %v1929_v6, %v2871_v58 }
 0x295   : > { %v1907_v13 = vpop.f32.mrf.mxu0  ;;  %v1931_v14 = vpop.f32.mrf.mxu1 }
 0x296   : > { %1251 = vst [vmem:[%s2823_s1 + $0x8] sm:$0xff] %v1191_v9  ;;  %v1268_v15 = vmax.f32 %v1191_v9, 0.0  ;;  %1259 = vst [vmem:[%s2823_s1 + $0x48] sm:$0xff] %v1223_v10  ;;  %v1276_v16 = vmax.f32 %v1223_v10, 0.0  ;;  %v1908_v17 = vadd.f32 %v1907_v13, %v1906_v7  ;;  %v1932_v18 = vadd.f32 %v1931_v14, %v1930_v8 }
 0x297   : > { %v1909_v19 = vpop.f32.mrf.mxu0  ;;  %v1933_v20 = vpop.f32.mrf.mxu1 }
 0x298   : > { %v1801_v21 = vpack.c.bf16 %v1268_v15, %v1267_v11  ;;  %v1821_v22 = vpack.c.bf16 %v1276_v16, %v1275_v12  ;;  %v1196_v23 = vadd.f32 %v1908_v17, %v2871_v58  ;;  %v1228_v24 = vadd.f32 %v1932_v18, %v2871_v58 }
 0x299   : > { %v1910_v25 = vpop.f32.mrf.mxu0  ;;  %v1934_v26 = vpop.f32.mrf.mxu1 }
 0x29a   : > { %1802 = vst [vmem:[%s2887_s25] sm:$0xff] %v1801_v21   ;;  %1856 = vst [vmem:[%s2887_s25 + $0x20] sm:$0xff] %v1821_v22   ;;  %v1911_v27 = vadd.f32 %v1910_v25, %v1909_v19  ;;  %v1935_v28 = vadd.f32 %v1934_v26, %v1933_v20  ;;  %v1269_v33 = vmax.f32 %v1196_v23, 0.0  ;;  %v1277_v34 = vmax.f32 %v1228_v24, 0.0 }
 0x29b   : > { %1252 = vst [vmem:[%s2823_s1 + $0x10] sm:$0xff] %v1196_v23  ;;  %1260 = vst [vmem:[%s2823_s1 + $0x50] sm:$0xff] %v1228_v24  ;;  %v1912_v29 = vpop.f32.mrf.mxu0  ;;  %v1936_v30 = vpop.f32.mrf.mxu1 }
 0x29c   : > { %v1199_v31 = vadd.f32 %v1911_v27, %v2871_v58  ;;  %v1231_v32 = vadd.f32 %v1935_v28, %v2871_v58 }
 0x29d   : > { %v1913_v35 = vpop.f32.mrf.mxu0  ;;  %v1937_v36 = vpop.f32.mrf.mxu1 }
 0x29e   : > { %1253 = vst [vmem:[%s2823_s1 + $0x18] sm:$0xff] %v1199_v31  ;;  %v1270_v37 = vmax.f32 %v1199_v31, 0.0  ;;  %1261 = vst [vmem:[%s2823_s1 + $0x58] sm:$0xff] %v1231_v32  ;;  %v1278_v38 = vmax.f32 %v1231_v32, 0.0  ;;  %v1914_v39 = vadd.f32 %v1913_v35, %v1912_v29  ;;  %v1938_v40 = vadd.f32 %v1937_v36, %v1936_v30 }
 0x29f   : > { %v1915_v41 = vpop.f32.mrf.mxu0  ;;  %v1939_v42 = vpop.f32.mrf.mxu1 }
 0x2a0   : > { %v1806_v43 = vpack.c.bf16 %v1270_v37, %v1269_v33  ;;  %v1826_v44 = vpack.c.bf16 %v1278_v38, %v1277_v34  ;;  %v1204_v45 = vadd.f32 %v1914_v39, %v2871_v58  ;;  %v1236_v46 = vadd.f32 %v1938_v40, %v2871_v58 }
 0x2a1   : > { %v1916_v47 = vpop.f32.mrf.mxu0  ;;  %v1940_v48 = vpop.f32.mrf.mxu1 }
 0x2a2   : > { %1853 = vst [vmem:[%s2887_s25 + $0x8] sm:$0xff] %v1806_v43   ;;  %1857 = vst [vmem:[%s2887_s25 + $0x28] sm:$0xff] %v1826_v44   ;;  %v1917_v49 = vadd.f32 %v1916_v47, %v1915_v41  ;;  %v1941_v50 = vadd.f32 %v1940_v48, %v1939_v42  ;;  %v1271_v55 = vmax.f32 %v1204_v45, 0.0  ;;  %v1279_v56 = vmax.f32 %v1236_v46, 0.0 }
 0x2a3   : > { %1254 = vst [vmem:[%s2823_s1 + $0x20] sm:$0xff] %v1204_v45  ;;  %1262 = vst [vmem:[%s2823_s1 + $0x60] sm:$0xff] %v1236_v46  ;;  %v1918_v51 = vpop.f32.mrf.mxu0  ;;  %v1942_v52 = vpop.f32.mrf.mxu1 }
 0x2a4   : > { %v1207_v53 = vadd.f32 %v1917_v49, %v2871_v58  ;;  %v1239_v54 = vadd.f32 %v1941_v50, %v2871_v58 }
 0x2a5   : > { %v1919_v57 = vpop.f32.mrf.mxu0  ;;  %v1943_v59 = vpop.f32.mrf.mxu1 }
 0x2a6   : > { %1255 = vst [vmem:[%s2823_s1 + $0x28] sm:$0xff] %v1207_v53  ;;  %v1272_v60 = vmax.f32 %v1207_v53, 0.0  ;;  %1263 = vst [vmem:[%s2823_s1 + $0x68] sm:$0xff] %v1239_v54  ;;  %v1280_v61 = vmax.f32 %v1239_v54, 0.0  ;;  %v1920_v62 = vadd.f32 %v1919_v57, %v1918_v51  ;;  %v1944_v63 = vadd.f32 %v1943_v59, %v1942_v52 }
 0x2a7   : > { %v1921_v0 = vpop.f32.mrf.mxu0  ;;  %v1945_v1 = vpop.f32.mrf.mxu1 }
 0x2a8   : > { %v1811_v2 = vpack.c.bf16 %v1272_v60, %v1271_v55  ;;  %v1831_v3 = vpack.c.bf16 %v1280_v61, %v1279_v56  ;;  %v1212_v4 = vadd.f32 %v1920_v62, %v2871_v58  ;;  %v1244_v5 = vadd.f32 %v1944_v63, %v2871_v58 }
 0x2a9   : > { %v1922_v6 = vpop.f32.mrf.mxu0  ;;  %v1946_v7 = vpop.f32.mrf.mxu1 }
 0x2aa   : > { %1854 = vst [vmem:[%s2887_s25 + $0x10] sm:$0xff] %v1811_v2   ;;  %1858 = vst [vmem:[%s2887_s25 + $0x30] sm:$0xff] %v1831_v3   ;;  %v1923_v8 = vadd.f32 %v1922_v6, %v1921_v0  ;;  %v1947_v9 = vadd.f32 %v1946_v7, %v1945_v1  ;;  %v1273_v12 = vmax.f32 %v1212_v4, 0.0  ;;  %v1281_v13 = vmax.f32 %v1244_v5, 0.0 }
 0x2ab   : > { %1256 = vst [vmem:[%s2823_s1 + $0x30] sm:$0xff] %v1212_v4  ;;  %1264 = vst [vmem:[%s2823_s1 + $0x70] sm:$0xff] %v1244_v5 }
 0x2ac   : > { %v1215_v10 = vadd.f32 %v1923_v8, %v2871_v58  ;;  %v1247_v11 = vadd.f32 %v1947_v9, %v2871_v58 }
 0x2ae   : > { %1257 = vst [vmem:[%s2823_s1 + $0x38] sm:$0xff] %v1215_v10  ;;  %v1274_v14 = vmax.f32 %v1215_v10, 0.0  ;;  %1265 = vst [vmem:[%s2823_s1 + $0x78] sm:$0xff] %v1247_v11  ;;  %v1282_v15 = vmax.f32 %v1247_v11, 0.0 }
 0x2af   : > { %2347 = shalt.err (!%p2344_p6)
}
 0x2b0   : > { %s2348_s10 = scalar_lea.hbm %s2919_s29, 2048  ;;  %s2352_s2 = scalar_lea.hbm %s3085_s14, 8192 }
 0x2b1   : > { %p2349_p2 = scmp.ne.s32.totalorder %s2919_s29, %s2348_s10  ;;  %p2353_p9 = scmp.lt.s32.totalorder %s2919_s29, %s3085_s14 }
 0x2b2   : > { %p2354_p8 = scmp.lt.s32.totalorder %s2352_s2, %s2348_s10 }
 0x2b3   : > { %p2350_p5 = pnand %p2349_p2, %p3086_p12 }
 0x2b4   : > { %p2355_p4 = por %p2354_p8, %p2353_p9 }
 0x2b5   : > { %p2351_p1 = pneg %p2350_p5 }
 0x2b7   : > { %p2356_p10 = pnand %p2355_p4, %p2351_p1 }
 0x2b9   : > { %2359 = shalt.err (!%p2356_p10)
}
 0x2ba   : > { %s2512_s5 = smov 128   ;;  %s2513_s7 = smov 8   ;;  %v1816_v58 = vpack.c.bf16 %v1274_v14, %v1273_v12  ;;  %v1836_v16 = vpack.c.bf16 %v1282_v15, %v1281_v13 }
 0x2bb   : > { %2034 = dma.vmem_to_hbm [thread:$0]  (%p3086_p12), %s2921_s6, 2048, %s2919_s29, %s2929_s4, %s2512_s5, %s2512_s5, %s2513_s7  }
 0x2bc   : > { %1855 = vst [vmem:[%s2887_s25 + $0x18] sm:$0xff] %v1816_v58   ;;  %1859 = vst [vmem:[%s2887_s25 + $0x38] sm:$0xff] %v1836_v16  }
 0x2bd PF: > { %s3087_s28 = sld [smem:[#allocation26_spill]]  ;;  %p2051_p3 = scmp.ge.s32.totalorder %s2502_s30, 2 }
 0x2be   : > { %s1398_s0 = sand.u32 1, %s2454_s18  }
 0x2bf   : > { %s1399_s12 = scalar_lea.sflag [#allocation6], %s1398_s0 }
 0x2c3   : > { %p3088_p7 = scmp.ne.s32.totalorder %s3087_s28, 0 }
 0x2c5   : > { %p2047_p11 = pnand %p2051_p3, %p3088_p7 }
 0x2c7   : > { %p2048_p0 = pneg %p2047_p11 }
 0x2c9   : > { %2437 = dma.done.wait (%p2048_p0), %s1399_s12, 2048  }
 0x2ca   : > { %2439 = vsyncadd (%p2048_p0), %s1399_s12, 4294965248  ;;  %s23_s30 = sadd.s32 1, %s2502_s30   ;;  %s3090_s25 = sld [smem:[#allocation27_spill]] }
 0x2cb   : > { %p2959_p13 = scmp.ge.s32.totalorder %s23_s30, 14   ;;  %s3091_s11 = sld [smem:[#allocation19_spill]] }
 0x2cc   : > { %s3092_s26 = sld [smem:[#allocation20_spill]]  ;;  %s3096_s15 = smov %s2446_s16 }
 0x2cd   : > { %s3093_s29 = sld [smem:[#allocation21_spill]]  ;;  %s3097_s16 = smov %s2450_s17 }
 0x2ce   : > { %s3094_s28 = sld [smem:[#allocation22_spill]]  ;;  %s3098_s17 = smov %s2756_s8 }
 0x2cf   : > { %s3095_s4 = sld [smem:[#allocation25_spill]]  ;;  %s3099_s18 = smov %s2458_s19 }
 0x2d0   : > { %s3100_s19 = smov %s2462_s20  ;;  %s3101_s20 = smov %s3090_s25 }
 0x2d1   : > { %s3102_s21 = smov %s2470_s22  ;;  %s3103_s22 = smov %s2474_s23 }
 0x2d2   : > { %s3104_s23 = smov %s2718_s13  ;;  %s3105_s24 = smov %s2490_s27 }
 0x2d3   : > { %s3106_s25 = smov %s3091_s11  ;;  %s3107_s27 = smov %s3093_s29 }
 0x2d4   :  { %22 = sbr.rel (!%p2959_p13) target bundleno = 19 (0x13), region = 117 }
 0x2d5   : > { %s3108_s29 = smov %s3095_s4 }
 0x2d9   :  { %1404 = vsyncpa [#allocation5], 1 }
 0x2da   :  { %1406 = vsyncpa [#allocation5 + $0x1], 1 }
 0x2db   :  { %1407 = vsyncpa [#allocation8], 1 }
 0x2dc   :  { %1409 = vsyncpa [#allocation8 + $0x1], 1 }
 0x2dd   :  { %1410 = vsyncpa [#allocation6], 1 }
 0x2de   :  { %1412 = vsyncpa [#allocation6 + $0x1], 1 }

</bundles_post_ra>
